<compile_context>
chip_gen: v5e
topology: v5e:2x2
jax: 0.10.0
libtpu: 0.0.40
codegen_flags: <defaults>
</compile_context>

<pallas_src>
import functools
import math

import jax
import jax.numpy as jnp
from jax.experimental import pallas as pl
from jax.experimental.pallas import tpu as pltpu


def _critic_kernel(s_ref, a_ref, w1s_ref, w1a_ref, b1_ref,
                   w2_ref, b2_ref, w3_ref, b3_ref, out_ref, *, out_is_row):
    # linear1 on the split weight (replaces concat + single dot): two MXU dots
    # accumulating in f32, then bias + ReLU on the VPU.
    h1 = (jnp.dot(s_ref[...], w1s_ref[...], preferred_element_type=jnp.float32)
          + jnp.dot(a_ref[...], w1a_ref[...], preferred_element_type=jnp.float32)
          + b1_ref[...])
    h1 = jnp.maximum(h1, 0.0)

    # linear2 + ReLU
    h2 = jnp.dot(h1, w2_ref[...], preferred_element_type=jnp.float32) + b2_ref[...]
    h2 = jnp.maximum(h2, 0.0)

    # linear3 + tanh
    if out_is_row:
        # w3 is a (1, H2) row (output_size == 1): reduce on VPU/XLU instead of
        # wasting the MXU on an N=1 matmul.
        y = jnp.sum(h2 * w3_ref[...], axis=-1, keepdims=True) + b3_ref[...]
    else:
        y = jnp.dot(h2, w3_ref[...], preferred_element_type=jnp.float32) + b3_ref[...]
    out_ref[...] = jnp.tanh(y).astype(out_ref.dtype)


def prepare_critic_params(params, state_size):
    """One-time conversion from PyTorch (out, in) layout to kernel layout.

    Done ONCE outside the forward path so no transposes/slices are emitted per
    call. W1 is split along its input axis into state / action halves.
    """
    w1 = params["w1"]                         # (H1, Ds + Da)
    out_size = params["w3"].shape[0]
    kp = {
        "w1s": jnp.asarray(w1[:, :state_size].T),   # (Ds, H1)
        "w1a": jnp.asarray(w1[:, state_size:].T),   # (Da, H1)
        "b1": params["b1"].reshape(1, -1),
        "w2": jnp.asarray(params["w2"].T),          # (H1, H2)
        "b2": params["b2"].reshape(1, -1),
        # output_size == 1: keep PyTorch row layout (1, H2) for a VPU reduce;
        # otherwise transpose once to (H2, out) for a plain MXU dot.
        "w3": jnp.asarray(params["w3"] if out_size == 1 else params["w3"].T),
        "b3": params["b3"].reshape(1, -1),
        "out_is_row": out_size == 1,
    }
    return kp


def critic_forward(state, action, kparams):
    """state: (B, 1, Ds) f32, action: (B, 1, Da) f32 -> (B, output_size) f32."""
    # Squeeze the size-1 middle dim (torch .squeeze() with seq=1).
    s2 = state.reshape(state.shape[0], state.shape[-1])
    a2 = action.reshape(action.shape[0], action.shape[-1])

    B, Ds = s2.shape
    Da = a2.shape[1]
    w1s, w1a = kparams["w1s"], kparams["w1a"]
    w2, w3 = kparams["w2"], kparams["w3"]
    b1, b2, b3 = kparams["b1"], kparams["b2"], kparams["b3"]
    out_size = b3.shape[-1]
    out_is_row = kparams["out_is_row"]

    # Batch tile: full batch if small (block == full dim is always legal),
    # otherwise 512 rows (multiple of 8) so DMAs pipeline against compute.
    TM = B if B <= 512 else 512
    grid = (pl.cdiv(B, TM),)

    act_map = lambda i: (i, 0)     # tiled over batch
    const_map = lambda i: (0, 0)   # weights/biases resident across the grid

    in_specs = [
        pl.BlockSpec((TM, Ds), act_map),
        pl.BlockSpec((TM, Da), act_map),
        pl.BlockSpec(w1s.shape, const_map),
        pl.BlockSpec(w1a.shape, const_map),
        pl.BlockSpec(b1.shape, const_map),
        pl.BlockSpec(w2.shape, const_map),
        pl.BlockSpec(b2.shape, const_map),
        pl.BlockSpec(w3.shape, const_map),
        pl.BlockSpec(b3.shape, const_map),
    ]
    out_specs = pl.BlockSpec((TM, out_size), act_map)

    return pl.pallas_call(
        functools.partial(_critic_kernel, out_is_row=out_is_row),
        out_shape=jax.ShapeDtypeStruct((B, out_size), jnp.float32),
        grid=grid,
        in_specs=in_specs,
        out_specs=out_specs,
        compiler_params=pltpu.CompilerParams(
            dimension_semantics=("parallel",)),
    )(s2, a2, w1s, w1a, b1, w2, b2, w3, b3)


def init_critic_params(key, input_size, hidden_size_1, hidden_size_2, output_size):
    """Deterministic init mimicking nn.Linear default: U(-1/sqrt(fan_in), +).

    Returned in PyTorch (out, in) layout; convert once with
    prepare_critic_params() before calling critic_forward().
    """
    keys = jax.random.split(key, 6)

    def lin(kw, kb, fan_in, fan_out):
        bound = 1.0 / math.sqrt(fan_in)
        w = jax.random.uniform(kw, (fan_out, fan_in), jnp.float32, -bound, bound)
        b = jax.random.uniform(kb, (fan_out,), jnp.float32, -bound, bound)
        return w, b

    w1, b1 = lin(keys[0], keys[1], input_size, hidden_size_1)
    w2, b2 = lin(keys[2], keys[3], hidden_size_1, hidden_size_2)
    w3, b3 = lin(keys[4], keys[5], hidden_size_2, output_size)
    return {"w1": w1, "b1": b1, "w2": w2, "b2": b2, "w3": w3, "b3": b3}


def critic_reference(state, action, params):
    """Pure-JAX reference matching the PyTorch forward exactly."""
    x = jnp.concatenate([state, action], axis=2)
    x = x.reshape(x.shape[0], x.shape[-1])            # .squeeze() with seq=1
    x = jax.nn.relu(x @ params["w1"].T + params["b1"])
    x = jax.nn.relu(x @ params["w2"].T + params["b2"])
    return jnp.tanh(x @ params["w3"].T + params["b3"])


if __name__ == "__main__":
    # Small shapes consistent with the module: Critic(input_size=32, 64, 32, 1)
    B, Ds, Da = 8, 24, 8
    input_size = Ds + Da
    hidden_size_1, hidden_size_2, output_size = 64, 32, 1

    key = jax.random.PRNGKey(0)
    k_state, k_action, k_params = jax.random.split(key, 3)

    state = jax.random.normal(k_state, (B, 1, Ds), dtype=jnp.float32)
    action = jax.random.normal(k_action, (B, 1, Da), dtype=jnp.float32)
    params = init_critic_params(k_params, input_size, hidden_size_1,
                                hidden_size_2, output_size)
    kparams = prepare_critic_params(params, state_size=Ds)   # one-time layout prep

    out = critic_forward(state, action, kparams)
    out = jax.block_until_ready(out)

    ref = critic_reference(state, action, params)
    assert out.shape == (B, output_size), out.shape
    assert jnp.allclose(out, ref, atol=1e-5, rtol=1e-5), \
        f"max abs err {jnp.max(jnp.abs(out - ref))}"

    print("KERNEL_OK")
</pallas_src>

<mosaic_0001>
module attributes {stable_mosaic.version = 11 : i64} {
  func.func @_critic_kernel(%arg0: i32, %arg1: memref<8x24xf32, #tpu.memory_space<vmem>>, %arg2: memref<8x8xf32, #tpu.memory_space<vmem>>, %arg3: memref<24x64xf32, #tpu.memory_space<vmem>>, %arg4: memref<8x64xf32, #tpu.memory_space<vmem>>, %arg5: memref<1x64xf32, #tpu.memory_space<vmem>>, %arg6: memref<64x32xf32, #tpu.memory_space<vmem>>, %arg7: memref<1x32xf32, #tpu.memory_space<vmem>>, %arg8: memref<1x32xf32, #tpu.memory_space<vmem>>, %arg9: memref<1x1xf32, #tpu.memory_space<vmem>>, %arg10: memref<8x1xf32, #tpu.memory_space<vmem>>) attributes {dimension_semantics = [#tpu.dimension_semantics<parallel>], iteration_bounds = array<i64: 1>, scalar_prefetch = 0 : i64, scratch_operands = 0 : i64, tpu.core_type = #tpu.core_type<tc>, window_params = [{transform_indices = @transform_0, window_bounds = array<i64: 8, 24>}, {transform_indices = @transform_1, window_bounds = array<i64: 8, 8>}, {pipeline_mode = #tpu.pipeline_mode<synchronous>, transform_indices = @transform_2, window_bounds = array<i64: 24, 64>}, {pipeline_mode = #tpu.pipeline_mode<synchronous>, transform_indices = @transform_3, window_bounds = array<i64: 8, 64>}, {pipeline_mode = #tpu.pipeline_mode<synchronous>, transform_indices = @transform_4, window_bounds = array<i64: 1, 64>}, {pipeline_mode = #tpu.pipeline_mode<synchronous>, transform_indices = @transform_5, window_bounds = array<i64: 64, 32>}, {pipeline_mode = #tpu.pipeline_mode<synchronous>, transform_indices = @transform_6, window_bounds = array<i64: 1, 32>}, {pipeline_mode = #tpu.pipeline_mode<synchronous>, transform_indices = @transform_7, window_bounds = array<i64: 1, 32>}, {pipeline_mode = #tpu.pipeline_mode<synchronous>, transform_indices = @transform_8, window_bounds = array<i64: 1, 1>}, {transform_indices = @transform_9, window_bounds = array<i64: 8, 1>}]} {
    %c0 = arith.constant 0 : index
    %c0_0 = arith.constant 0 : index
    %0 = vector.load %arg1[%c0, %c0_0] : memref<8x24xf32, #tpu.memory_space<vmem>>, vector<8x24xf32>
    %c0_1 = arith.constant 0 : index
    %c0_2 = arith.constant 0 : index
    %1 = vector.load %arg3[%c0_1, %c0_2] : memref<24x64xf32, #tpu.memory_space<vmem>>, vector<24x64xf32>
    %cst = arith.constant dense<0.000000e+00> : vector<8x64xf32>
    %2 = tpu.matmul %0, %1, %cst {dimension_numbers = #tpu.dot_dimension_numbers<[1], [0], [0], [1], [0, 0, 1, 1], [], []>} : vector<8x24xf32>, vector<24x64xf32>, vector<8x64xf32> -> vector<8x64xf32>
    %c0_3 = arith.constant 0 : index
    %c0_4 = arith.constant 0 : index
    %3 = vector.load %arg2[%c0_3, %c0_4] : memref<8x8xf32, #tpu.memory_space<vmem>>, vector<8x8xf32>
    %c0_5 = arith.constant 0 : index
    %c0_6 = arith.constant 0 : index
    %4 = vector.load %arg4[%c0_5, %c0_6] : memref<8x64xf32, #tpu.memory_space<vmem>>, vector<8x64xf32>
    %cst_7 = arith.constant dense<0.000000e+00> : vector<8x64xf32>
    %5 = tpu.matmul %3, %4, %cst_7 {dimension_numbers = #tpu.dot_dimension_numbers<[1], [0], [0], [1], [0, 0, 1, 1], [], []>} : vector<8x8xf32>, vector<8x64xf32>, vector<8x64xf32> -> vector<8x64xf32>
    %6 = arith.addf %2, %5 : vector<8x64xf32>
    %c0_8 = arith.constant 0 : index
    %c0_9 = arith.constant 0 : index
    %7 = vector.load %arg5[%c0_8, %c0_9] : memref<1x64xf32, #tpu.memory_space<vmem>>, vector<1x64xf32>
    %8 = vector.broadcast %7 : vector<1x64xf32> to vector<8x64xf32>
    %9 = arith.addf %6, %8 : vector<8x64xf32>
    %cst_10 = arith.constant 0.000000e+00 : f32
    %10 = vector.broadcast %cst_10 : f32 to vector<8x64xf32>
    %11 = arith.maximumf %9, %10 : vector<8x64xf32>
    %c0_11 = arith.constant 0 : index
    %c0_12 = arith.constant 0 : index
    %12 = vector.load %arg6[%c0_11, %c0_12] : memref<64x32xf32, #tpu.memory_space<vmem>>, vector<64x32xf32>
    %cst_13 = arith.constant dense<0.000000e+00> : vector<8x32xf32>
    %13 = tpu.matmul %11, %12, %cst_13 {dimension_numbers = #tpu.dot_dimension_numbers<[1], [0], [0], [1], [0, 0, 1, 1], [], []>} : vector<8x64xf32>, vector<64x32xf32>, vector<8x32xf32> -> vector<8x32xf32>
    %c0_14 = arith.constant 0 : index
    %c0_15 = arith.constant 0 : index
    %14 = vector.load %arg7[%c0_14, %c0_15] : memref<1x32xf32, #tpu.memory_space<vmem>>, vector<1x32xf32>
    %15 = vector.broadcast %14 : vector<1x32xf32> to vector<8x32xf32>
    %16 = arith.addf %13, %15 : vector<8x32xf32>
    %cst_16 = arith.constant 0.000000e+00 : f32
    %17 = vector.broadcast %cst_16 : f32 to vector<8x32xf32>
    %18 = arith.maximumf %16, %17 : vector<8x32xf32>
    %c0_17 = arith.constant 0 : index
    %c0_18 = arith.constant 0 : index
    %19 = vector.load %arg8[%c0_17, %c0_18] : memref<1x32xf32, #tpu.memory_space<vmem>>, vector<1x32xf32>
    %20 = vector.broadcast %19 : vector<1x32xf32> to vector<8x32xf32>
    %21 = arith.mulf %18, %20 : vector<8x32xf32>
    %cst_19 = arith.constant dense<0.000000e+00> : vector<8xf32>
    %22 = vector.multi_reduction <add>, %21, %cst_19 [1] : vector<8x32xf32> to vector<8xf32>
    %23 = vector.shape_cast %22 : vector<8xf32> to vector<8x1xf32>
    %c0_20 = arith.constant 0 : index
    %c0_21 = arith.constant 0 : index
    %24 = vector.load %arg9[%c0_20, %c0_21] : memref<1x1xf32, #tpu.memory_space<vmem>>, vector<1x1xf32>
    %25 = vector.broadcast %24 : vector<1x1xf32> to vector<8x1xf32>
    %26 = arith.addf %23, %25 : vector<8x1xf32>
    %27 = math.tanh %26 : vector<8x1xf32>
    %c0_22 = arith.constant 0 : index
    %c0_23 = arith.constant 0 : index
    %28 = vector.load %arg10[%c0_22, %c0_23] : memref<8x1xf32, #tpu.memory_space<vmem>>, vector<8x1xf32>
    tpu.vector_store %arg10[%c0_22, %c0_23], %27 {strides = array<i32>} : memref<8x1xf32, #tpu.memory_space<vmem>>, vector<8x1xf32>,
    return
  }
  func.func @transform_0(%arg0: i32) -> (i32, i32) {
    %c0_i32 = arith.constant 0 : i32
    %c0_i32_0 = arith.constant 0 : i32
    return %arg0, %c0_i32 : i32, i32
  }
  func.func @transform_1(%arg0: i32) -> (i32, i32) {
    %c0_i32 = arith.constant 0 : i32
    %c0_i32_0 = arith.constant 0 : i32
    return %arg0, %c0_i32 : i32, i32
  }
  func.func @transform_2(%arg0: i32) -> (i32, i32) {
    %c0_i32 = arith.constant 0 : i32
    %c0_i32_0 = arith.constant 0 : i32
    %c0_i32_1 = arith.constant 0 : i32
    return %c0_i32, %c0_i32_0 : i32, i32
  }
  func.func @transform_3(%arg0: i32) -> (i32, i32) {
    %c0_i32 = arith.constant 0 : i32
    %c0_i32_0 = arith.constant 0 : i32
    %c0_i32_1 = arith.constant 0 : i32
    return %c0_i32, %c0_i32_0 : i32, i32
  }
  func.func @transform_4(%arg0: i32) -> (i32, i32) {
    %c0_i32 = arith.constant 0 : i32
    %c0_i32_0 = arith.constant 0 : i32
    %c0_i32_1 = arith.constant 0 : i32
    return %c0_i32, %c0_i32_0 : i32, i32
  }
  func.func @transform_5(%arg0: i32) -> (i32, i32) {
    %c0_i32 = arith.constant 0 : i32
    %c0_i32_0 = arith.constant 0 : i32
    %c0_i32_1 = arith.constant 0 : i32
    return %c0_i32, %c0_i32_0 : i32, i32
  }
  func.func @transform_6(%arg0: i32) -> (i32, i32) {
    %c0_i32 = arith.constant 0 : i32
    %c0_i32_0 = arith.constant 0 : i32
    %c0_i32_1 = arith.constant 0 : i32
    return %c0_i32, %c0_i32_0 : i32, i32
  }
  func.func @transform_7(%arg0: i32) -> (i32, i32) {
    %c0_i32 = arith.constant 0 : i32
    %c0_i32_0 = arith.constant 0 : i32
    %c0_i32_1 = arith.constant 0 : i32
    return %c0_i32, %c0_i32_0 : i32, i32
  }
  func.func @transform_8(%arg0: i32) -> (i32, i32) {
    %c0_i32 = arith.constant 0 : i32
    %c0_i32_0 = arith.constant 0 : i32
    %c0_i32_1 = arith.constant 0 : i32
    return %c0_i32, %c0_i32_0 : i32, i32
  }
  func.func @transform_9(%arg0: i32) -> (i32, i32) {
    %c0_i32 = arith.constant 0 : i32
    %c0_i32_0 = arith.constant 0 : i32
    return %arg0, %c0_i32 : i32, i32
  }
}

</mosaic_0001>

<bundles_post_ra>
// kernel: tpu_custom_call.1
= control target key start
LH: loop header
LB: loop body
LE: loop exit
PB: predicated region body
PF: predicated region fallthrough
CT: control target
= control target key end

     0   :  { %vm40_vm0 = vcmask 64512   ;;  %vm64_vm1 = vcmask 195584   ;;  %vm106_vm2 = vcmask 523264   ;;  %vm136_vm3 = vcmask 261120   ;;  %s268_s2 = inlined_call_operand.vmem [shape: f32[24,64], index: 2, kind: input, shape index: {}]   ;;  %s269_s3 = inlined_call_operand.vmem [shape: f32[8,64], index: 3, kind: input, shape index: {}]   ;;  %s270_s1 = inlined_call_operand.vmem [shape: f32[8,8], index: 1, kind: input, shape index: {}]   ;;  %s271_s5 = inlined_call_operand.vmem [shape: f32[64,32], index: 5, kind: input, shape index: {}]   ;;  %s272_s0 = inlined_call_operand.vmem [shape: f32[8,24], index: 0, kind: input, shape index: {}]   ;;  %s273_s4 = inlined_call_operand.vmem [shape: f32[1,64], index: 4, kind: input, shape index: {}]   ;;  %s274_s6 = inlined_call_operand.vmem [shape: f32[1,32], index: 6, kind: input, shape index: {}]   ;;  %s275_s7 = inlined_call_operand.vmem [shape: f32[1,32], index: 7, kind: input, shape index: {}]   ;;  %s276_s8 = inlined_call_operand.<no memory space> [shape: f32[1,1], index: 8, kind: input, shape index: {}]   ;;  %s277_s9 = inlined_call_operand.vmem [shape: f32[8,1], index: 9, kind: output, shape index: {}]  }
   0x1   :  { %v37_v0 = vld [vmem:[%s268_s2 + $0x10] sm:$0xff]  ;;  %v36_v1 = vld [vmem:[%s268_s2 + $0x8] sm:$0xff]  ;;  %v39_v2 = vld [vmem:[%s269_s3] sm:$0xff]  ;;  %v14_v20 = vstv %s276_s8  ;;  %vm146_vm4 = vcmask 7168  }
   0x2   :  { %81 = vmatpush.msra.mxu1 %v37_v0  ;;  %59 = vmatpush.msra.mxu0 %v39_v2  ;;  %v38_v3 = vld [vmem:[%s270_s1] sm:$0xff]  ;;  %v101_v5 = vld [vmem:[%s271_s5 + $0x38] sm:$0xff]  ;;  %v100_v6 = vld [vmem:[%s271_s5 + $0x30] sm:$0xff]  ;;  %15 = vst [vmem:[#allocation2] sm:$0x1] %v14_v20 }
   0x3   :  { %v35_v4 = vld [vmem:[%s268_s2] sm:$0xff]  ;;  %152 = vmatmul.msk.f32.vlgmr.msra.gmra.mxu0 %vm40_vm0, %v38_v3  ;;  %118 = vmatpush.msra.mxu2 %v101_v5  ;;  %v99_v8 = vld [vmem:[%s271_s5 + $0x28] sm:$0xff]  ;;  %v97_v10 = vld [vmem:[%s271_s5 + $0x18] sm:$0xff] }
   0x4   :  { %82 = vmatpush.msra.mxu1 %v36_v1  ;;  %v34_v7 = vld [vmem:[%s272_s0] sm:$0xff]  ;;  %v96_v11 = vld [vmem:[%s271_s5 + $0x10] sm:$0xff]  ;;  %v95_v12 = vld [vmem:[%s271_s5 + $0x8] sm:$0xff] }
   0x5   :  { %119 = vmatpush.msra.mxu2 %v100_v6  ;;  %v98_v9 = vld [vmem:[%s271_s5 + $0x20] sm:$0xff] }
   0x6   :  { %83 = vmatpush.msra.mxu1 %v35_v4  ;;  %v94_v13 = vld [vmem:[%s271_s5] sm:$0xff] }
   0x7   :  { %153 = vmatmul.msk.f32.vlgmr.msra.gmra.mxu1 %vm64_vm1, %v34_v7  ;;  %120 = vmatpush.msra.mxu2 %v99_v8  ;;  %v155_v15 = vld [vmem:[%s273_s4] ss:$0 sm:$0xff] }
   0x8   :  { %v156_v21 = vld [vmem:[%s274_s6] ss:$0 sm:$0xff] }
   0x9   :  { %121 = vmatpush.msra.mxu2 %v98_v9  ;;  %v157_v24 = vld [vmem:[%s275_s7] ss:$0 sm:$0xff] }
   0xa   :  { %v158_v28 = vld [vmem:[#allocation2] ss:$0 sm:$0xff] }
   0xb   :  { %122 = vmatpush.msra.mxu2 %v97_v10 }
   0xd   :  { %123 = vmatpush.msra.mxu2 %v96_v11 }
   0xf   :  { %124 = vmatpush.msra.mxu2 %v95_v12 }
  0x11   :  { %125 = vmatpush.msra.mxu2 %v94_v13 }
  0x80   :  { %v61_v14 = vpop.f32.mrf.mxu0 }
  0x84   :  { %v85_v16 = vpop.f32.mrf.mxu1 }
  0x85   :  { %v86_v17 = vadd.f32 %v85_v16, %v61_v14 }
  0x87   :  { %v92_v18 = vadd.f32 %v155_v15, %v86_v17 }
  0x89   :  { %v93_v19 = vmax.f32 %v92_v18, 0.0 }
  0x8b   :  { %154 = vmatmul.msk.f32.vlgmr.msra.gmra.mxu2 %vm106_vm2, %v93_v19 }
 0x10e   :  { %v127_v22 = vpop.f32.mrf.mxu2 }
 0x10f   :  { %v128_v23 = vadd.f32 %v156_v21, %v127_v22 }
 0x111   :  { %v130_v25 = vmax.f32 %v128_v23, 0.0 }
 0x113   :  { %v135_v26 = vmul.f32 %v157_v24, %v130_v25 }
 0x115   :  { %v137_v27 = vsel %vm136_vm3, %v135_v26, 0.0 }
 0x116   :  { %138 = vadd.xlane.f32.xlu0 %v137_v27 }
 0x189   :  { %v139_v29 = vpop.xlane.xlu0 %138 }
 0x18a   :  { %v144_v30 = vadd.f32 %v158_v28, %v139_v29 }
 0x18c   :  { %159 = vtanh.f32 %v144_v30 }
 0x192   :  { %v160_v31 = vpop.eup %159 }
 0x193   :  { %147 = vst.msk [vmem:[%s277_s9] sm:$0xff] %vm146_vm4, %v160_v31 }

</bundles_post_ra>
